<compile_context>
chip_gen: v6e
topology: v6e:2x2x1
jax: 0.10.0
libtpu: 0.0.40
codegen_flags: <defaults>
</compile_context>

<pallas_src>
import functools

import jax
import jax.numpy as jnp
from jax.experimental import pallas as pl
from jax.experimental.pallas import tpu as pltpu


def _ce2d_kernel(logits_ref, target_ref, weight_ref, loss_ref, count_ref,
                 acc_loss, acc_count, *, hw_total, need_tail_mask):
    """One (batch, split, pixel-tile) grid step.

    logits_ref : (1, C, tile_s, L)  input dtype (f32 / bf16)
    target_ref : (1, 1, tile_s, L)  int32, negative = ignore
    weight_ref : (C, 1)             class weights (resident)
    loss_ref   : (1, 1, 1, 1)       f32 partial weighted-NLL sum
    count_ref  : (1, 1, 1, 1)       int32 partial valid-pixel count
    acc_loss   : (tile_s, L) f32   VMEM accumulator
    acc_count  : (tile_s, L) int32 VMEM accumulator
    """
    t_idx = pl.program_id(2)
    num_t = pl.num_programs(2)

    @pl.when(t_idx == 0)
    def _():
        acc_loss[...] = jnp.zeros_like(acc_loss)
        acc_count[...] = jnp.zeros_like(acc_count)

    x = logits_ref[0].astype(jnp.float32)            # (C, tile_s, L)
    c, tile_s, lanes = x.shape
    tgt = target_ref[0].reshape(tile_s, lanes)       # (tile_s, L) int32

    valid = tgt >= 0                                 # (tile_s, L)
    if need_tail_mask:
        # Only the globally-last pixel block can run past the end of H*W.
        s_block = pl.program_id(1) * num_t + t_idx
        row = jax.lax.broadcasted_iota(jnp.int32, (tile_s, lanes), 0)
        lane = jax.lax.broadcasted_iota(jnp.int32, (tile_s, lanes), 1)
        pix = (s_block * tile_s + row) * lanes + lane
        valid = jnp.logical_and(valid, pix < hw_total)
    t_safe = jnp.where(valid, tgt, 0)

    # log-sum-exp over the class axis (leading, untiled): cross-vreg VALU
    # maxes/adds + EUP exp/log; pixels stay dense on sublanes x lanes and
    # nothing crosses lanes until the final per-block reduce.
    m = jnp.max(x, axis=0)                           # (tile_s, L)
    e = jnp.exp(x - m[None])                         # (C, tile_s, L)
    lse = jnp.log(jnp.sum(e, axis=0)) + m            # (tile_s, L)

    # One-hot select of the target-class logit and its class weight.
    wgt = weight_ref[...].astype(jnp.float32).reshape(c, 1, 1)
    cls = jax.lax.broadcasted_iota(jnp.int32, (c, tile_s, lanes), 0)
    onehot = cls == t_safe[None]                     # (C, tile_s, L)
    x_t = jnp.sum(jnp.where(onehot, x, 0.0), axis=0)       # (tile_s, L)
    w_t = jnp.sum(jnp.where(onehot, wgt, 0.0), axis=0)     # (tile_s, L)

    # -w * log_softmax(x)[t] == w * (lse - x_t); invalid / OOB pixels add 0.
    # (Garbage in OOB lanes cannot leak: jnp.where is a select.)
    acc_loss[...] += jnp.where(valid, w_t * (lse - x_t), 0.0)
    acc_count[...] += valid.astype(jnp.int32)

    @pl.when(t_idx == num_t - 1)
    def _():
        loss_ref[...] = jnp.sum(acc_loss[...], keepdims=True).reshape(1, 1, 1, 1)
        count_ref[...] = jnp.sum(acc_count[...], keepdims=True).reshape(1, 1, 1, 1)


@functools.partial(jax.jit, static_argnames=("size_average", "max_tile_pixels"))
def cross_entropy2d(inp, target, weight, size_average=True, max_tile_pixels=None):
    """inp: (N, C, H, W) float; target: (N, H, W) int (negative = ignore)."""
    n, c, h, w = inp.shape
    hw = h * w
    elem = jnp.dtype(inp.dtype).itemsize

    tgt = target.astype(jnp.int32)
    wgt = jnp.asarray(weight, dtype=jnp.float32).reshape(c, 1)

    # ---- C- and VMEM-aware tile selection -------------------------------
    try:
        vmem_cap = int(pltpu.get_tpu_info().vmem_capacity_bytes)
    except Exception:
        vmem_cap = 64 * 1024 * 1024   # conservative (v7x-sized) fallback
    block_budget = 2 * 1024 * 1024                      # ~2 MiB logits block
    vmem_budget = min(vmem_cap // 4, 12 * 1024 * 1024)  # safe on v5e/v6e/v7x
    per_pixel_in = c * elem + 4                         # logits + int32 target
    tile_pixels = min(block_budget // max(c * elem, 1),
                      vmem_budget // (2 * per_pixel_in + 8))
    if max_tile_pixels is not None:
        tile_pixels = min(tile_pixels, int(max_tile_pixels))
    tile_pixels = max(tile_pixels, 128)
    vmem_limit = int(min(vmem_cap // 2, 32 * 1024 * 1024))

    if hw % 128 == 0:
        # Repacked layout: pixels fill both sublanes and lanes.
        s_total = hw // 128
        lanes = 128
        sub = 8 * max(4 // elem, 1)           # sublane multiple for this dtype
        tile_s = max(tile_pixels // 128, 1)
        if tile_s >= s_total:
            tile_s = s_total
        else:
            tile_s = max((tile_s // sub) * sub, sub)
            if tile_s >= s_total:
                tile_s = s_total
        logits = inp.reshape(n, c, s_total, lanes)
        tgt4 = tgt.reshape(n, 1, s_total, lanes)
        num_blocks = pl.cdiv(s_total, tile_s)
        need_tail_mask = (num_blocks * tile_s != s_total)
    else:
        # Fallback: pixels live only on the lane axis.
        tile_s = 1
        lanes = hw if tile_pixels >= hw else max((tile_pixels // 128) * 128, 128)
        logits = inp.reshape(n, c, 1, hw)
        tgt4 = tgt.reshape(n, 1, 1, hw)
        num_blocks = pl.cdiv(hw, lanes)
        need_tail_mask = (num_blocks * lanes != hw)

    # ---- second parallel axis so batch==1 still fills both v7x cores ----
    splits = 1
    if n == 1 and num_blocks >= 2 and num_blocks % 2 == 0:
        splits = 2
    inner = num_blocks // splits

    if hw % 128 == 0:
        blk_idx = lambda b, s, t: (b, 0, s * inner + t, 0)
    else:
        blk_idx = lambda b, s, t: (b, 0, 0, s * inner + t)

    kernel = functools.partial(_ce2d_kernel, hw_total=hw,
                               need_tail_mask=need_tail_mask)

    m_pix = n * hw
    cost = pl.CostEstimate(
        flops=10 * m_pix * c,
        transcendentals=m_pix * (c + 1),
        bytes_accessed=m_pix * c * elem + m_pix * 4 + c * 4 + 2 * n * splits * 4,
    )

    loss_part, count_part = pl.pallas_call(
        kernel,
        out_shape=(
            jax.ShapeDtypeStruct((n, splits, 1, 1), jnp.float32),
            jax.ShapeDtypeStruct((n, splits, 1, 1), jnp.int32),
        ),
        grid_spec=pltpu.PrefetchScalarGridSpec(
            num_scalar_prefetch=0,
            grid=(n, splits, inner),
            in_specs=[
                pl.BlockSpec((1, c, tile_s, lanes), blk_idx),
                pl.BlockSpec((1, 1, tile_s, lanes), blk_idx),
                pl.BlockSpec((c, 1), lambda b, s, t: (0, 0)),
            ],
            out_specs=[
                pl.BlockSpec((1, 1, 1, 1), lambda b, s, t: (b, s, 0, 0)),
                pl.BlockSpec((1, 1, 1, 1), lambda b, s, t: (b, s, 0, 0)),
            ],
            scratch_shapes=[
                pltpu.VMEM((tile_s, lanes), jnp.float32),
                pltpu.VMEM((tile_s, lanes), jnp.int32),
            ],
        ),
        compiler_params=pltpu.CompilerParams(
            dimension_semantics=("parallel", "parallel", "arbitrary"),
            vmem_limit_bytes=vmem_limit),
        cost_estimate=cost,
    )(logits, tgt4, wgt)

    loss = jnp.sum(loss_part)
    if size_average:
        # Matches the PyTorch module: divide by #valid pixels
        # (non-finite if no pixel is valid, same as mask.sum() == 0 in torch).
        loss = loss / jnp.sum(count_part).astype(jnp.float32)
    return loss


def _reference(inp, target, weight, size_average=True):
    """Pure-JAX reference mirroring the PyTorch module."""
    n, c, h, w = inp.shape
    logp = jax.nn.log_softmax(inp.astype(jnp.float32), axis=1)
    logp = jnp.transpose(logp, (0, 2, 3, 1)).reshape(-1, c)
    t = target.reshape(-1).astype(jnp.int32)
    valid = t >= 0
    t_safe = jnp.where(valid, t, 0)
    logp_t = jnp.take_along_axis(logp, t_safe[:, None], axis=1)[:, 0]
    w_t = jnp.asarray(weight, jnp.float32)[t_safe]
    loss = jnp.sum(jnp.where(valid, -w_t * logp_t, 0.0))
    if size_average:
        loss = loss / jnp.sum(valid.astype(jnp.float32))
    return loss


if __name__ == "__main__":
    # Module's default weight defines 5 classes.
    weight5 = jnp.array([10 / 9, 10 / 9, 10 / 9, 10 / 9, 5 / 9], dtype=jnp.float32)
    key = jax.random.PRNGKey(0)

    def run_case(n, c, h, w, wvec, size_average, max_tile_pixels=None, salt=0):
        k1, k2 = jax.random.split(jax.random.fold_in(key, salt))
        x = jax.random.normal(k1, (n, c, h, w), dtype=jnp.float32)
        # Targets in [-1, c): -1 means "ignore this pixel".
        t = jax.random.randint(k2, (n, h, w), minval=-1, maxval=c, dtype=jnp.int32)
        out = cross_entropy2d(x, t, wvec, size_average=size_average,
                              max_tile_pixels=max_tile_pixels)
        out = jax.block_until_ready(out)
        ref = _reference(x, t, wvec, size_average=size_average)
        assert jnp.allclose(out, ref, rtol=1e-4, atol=1e-4), (n, c, h, w, out, ref)

    # 1) Module-default shapes -> repacked (sublane+lane) layout.
    run_case(2, 5, 16, 16, weight5, True, salt=0)
    # 2) H*W not a multiple of 128 -> lane-layout fallback with ragged tail mask.
    run_case(2, 4, 15, 20, jnp.ones((4,), jnp.float32), False,
             max_tile_pixels=128, salt=1)
    # 3) Repacked layout with a ragged sublane tail.
    run_case(1, 5, 48, 48, weight5, True, max_tile_pixels=1024, salt=2)
    # 4) Batch-1: pixel-block axis split across the second parallel grid axis.
    run_case(1, 5, 64, 64, weight5, True, max_tile_pixels=1024, salt=3)

    print("KERNEL_OK")
</pallas_src>

<mosaic_0001>
module attributes {stable_mosaic.version = 11 : i64} {
  func.func @_ce2d_kernel(%arg0: i32, %arg1: i32, %arg2: i32, %arg3: memref<1x5x2x128xf32, #tpu.memory_space<vmem>>, %arg4: memref<1x1x2x128xi32, #tpu.memory_space<vmem>>, %arg5: memref<5x1xf32, #tpu.memory_space<vmem>>, %arg6: memref<1x1x1x1xf32, #tpu.memory_space<vmem>>, %arg7: memref<1x1x1x1xi32, #tpu.memory_space<vmem>>, %arg8: memref<2x128xf32, #tpu.memory_space<vmem>>, %arg9: memref<2x128xi32, #tpu.memory_space<vmem>>) attributes {dimension_semantics = [#tpu.dimension_semantics<parallel>, #tpu.dimension_semantics<parallel>, #tpu.dimension_semantics<arbitrary>], iteration_bounds = array<i64: 2, 1, 1>, scalar_prefetch = 0 : i64, scratch_operands = 2 : i64, tpu.core_type = #tpu.core_type<tc>, window_params = [{transform_indices = @transform_0, window_bounds = array<i64: 1, 5, 2, 128>}, {transform_indices = @transform_1, window_bounds = array<i64: 1, 1, 2, 128>}, {pipeline_mode = #tpu.pipeline_mode<synchronous>, transform_indices = @transform_2, window_bounds = array<i64: 5, 1>}, {transform_indices = @transform_3, window_bounds = array<i64: 1, 1, 1, 1>}, {transform_indices = @transform_4, window_bounds = array<i64: 1, 1, 1, 1>}]} {
    %c0_i32 = arith.constant 0 : i32
    %0 = arith.cmpi eq, %arg2, %c0_i32 : i32
    %1 = arith.extui %0 : i1 to i32
    %c0_i32_0 = arith.constant 0 : i32
    %2 = arith.cmpi ne, %1, %c0_i32_0 : i32
    scf.if %2 {
      %cst_28 = arith.constant 0.000000e+00 : f32
      %48 = vector.broadcast %cst_28 : f32 to vector<2x128xf32>
      %c0_29 = arith.constant 0 : index
      %c0_30 = arith.constant 0 : index
      %49 = vector.load %arg8[%c0_29, %c0_30] : memref<2x128xf32, #tpu.memory_space<vmem>>, vector<2x128xf32>
      tpu.vector_store %arg8[%c0_29, %c0_30], %48 {strides = array<i32>} : memref<2x128xf32, #tpu.memory_space<vmem>>, vector<2x128xf32>,
      %c0_i32_31 = arith.constant 0 : i32
      %50 = vector.broadcast %c0_i32_31 : i32 to vector<2x128xi32>
      %c0_32 = arith.constant 0 : index
      %c0_33 = arith.constant 0 : index
      %51 = vector.load %arg9[%c0_32, %c0_33] : memref<2x128xi32, #tpu.memory_space<vmem>>, vector<2x128xi32>
      tpu.vector_store %arg9[%c0_32, %c0_33], %50 {strides = array<i32>} : memref<2x128xi32, #tpu.memory_space<vmem>>, vector<2x128xi32>,
    } else {
    }
    %c0 = arith.constant 0 : index
    %c0_1 = arith.constant 0 : index
    %c0_2 = arith.constant 0 : index
    %c0_3 = arith.constant 0 : index
    %3 = vector.load %arg3[%c0, %c0_1, %c0_2, %c0_3] : memref<1x5x2x128xf32, #tpu.memory_space<vmem>>, vector<1x5x2x128xf32>
    %4 = vector.shape_cast %3 : vector<1x5x2x128xf32> to vector<5x2x128xf32>
    %c0_4 = arith.constant 0 : index
    %c0_5 = arith.constant 0 : index
    %c0_6 = arith.constant 0 : index
    %c0_7 = arith.constant 0 : index
    %5 = vector.load %arg4[%c0_4, %c0_5, %c0_6, %c0_7] : memref<1x1x2x128xi32, #tpu.memory_space<vmem>>, vector<1x1x2x128xi32>
    %6 = vector.shape_cast %5 : vector<1x1x2x128xi32> to vector<1x2x128xi32>
    %7 = vector.shape_cast %6 : vector<1x2x128xi32> to vector<2x128xi32>
    %c0_i32_8 = arith.constant 0 : i32
    %8 = vector.broadcast %c0_i32_8 : i32 to vector<2x128xi32>
    %9 = arith.cmpi sge, %7, %8 : vector<2x128xi32>
    %c0_i32_9 = arith.constant 0 : i32
    %10 = vector.broadcast %c0_i32_9 : i32 to vector<2x128xi32>
    %11 = arith.select %9, %7, %10 : vector<2x128xi1>, vector<2x128xi32>
    %cst = arith.constant dense<0xFF800000> : vector<2x128xf32>
    %12 = vector.multi_reduction <maximumf>, %4, %cst [0] : vector<5x2x128xf32> to vector<2x128xf32>
    %13 = vector.shape_cast %12 : vector<2x128xf32> to vector<1x2x128xf32>
    %14 = vector.broadcast %13 : vector<1x2x128xf32> to vector<5x2x128xf32>
    %15 = arith.subf %4, %14 : vector<5x2x128xf32>
    %16 = math.exp %15 : vector<5x2x128xf32>
    %cst_10 = arith.constant dense<0.000000e+00> : vector<2x128xf32>
    %17 = vector.multi_reduction <add>, %16, %cst_10 [0] : vector<5x2x128xf32> to vector<2x128xf32>
    %18 = math.log %17 : vector<2x128xf32>
    %19 = arith.addf %18, %12 : vector<2x128xf32>
    %c0_11 = arith.constant 0 : index
    %c0_12 = arith.constant 0 : index
    %20 = vector.load %arg5[%c0_11, %c0_12] : memref<5x1xf32, #tpu.memory_space<vmem>>, vector<5x1xf32>
    %21 = vector.shape_cast %20 : vector<5x1xf32> to vector<5x1x1xf32>
    %22 = tpu.iota {dimensions = array<i32: 0>} : vector<5x2x128xi32>
    %23 = vector.shape_cast %11 : vector<2x128xi32> to vector<1x2x128xi32>
    %24 = vector.broadcast %23 : vector<1x2x128xi32> to vector<5x2x128xi32>
    %25 = arith.cmpi eq, %22, %24 : vector<5x2x128xi32>
    %cst_13 = arith.constant 0.000000e+00 : f32
    %26 = vector.broadcast %cst_13 : f32 to vector<5x2x128xf32>
    %27 = arith.select %25, %4, %26 : vector<5x2x128xi1>, vector<5x2x128xf32>
    %cst_14 = arith.constant dense<0.000000e+00> : vector<2x128xf32>
    %28 = vector.multi_reduction <add>, %27, %cst_14 [0] : vector<5x2x128xf32> to vector<2x128xf32>
    %cst_15 = arith.constant 0.000000e+00 : f32
    %29 = vector.shape_cast %21 : vector<5x1x1xf32> to vector<5x1x1xf32>
    %30 = vector.broadcast %29 : vector<5x1x1xf32> to vector<5x2x128xf32>
    %31 = vector.broadcast %cst_15 : f32 to vector<5x2x128xf32>
    %32 = arith.select %25, %30, %31 : vector<5x2x128xi1>, vector<5x2x128xf32>
    %cst_16 = arith.constant dense<0.000000e+00> : vector<2x128xf32>
    %33 = vector.multi_reduction <add>, %32, %cst_16 [0] : vector<5x2x128xf32> to vector<2x128xf32>
    %c0_17 = arith.constant 0 : index
    %c0_18 = arith.constant 0 : index
    %34 = vector.load %arg8[%c0_17, %c0_18] : memref<2x128xf32, #tpu.memory_space<vmem>>, vector<2x128xf32>
    %35 = arith.subf %19, %28 : vector<2x128xf32>
    %36 = arith.mulf %33, %35 : vector<2x128xf32>
    %cst_19 = arith.constant 0.000000e+00 : f32
    %37 = vector.broadcast %cst_19 : f32 to vector<2x128xf32>
    %38 = arith.select %9, %36, %37 : vector<2x128xi1>, vector<2x128xf32>
    %39 = arith.addf %34, %38 : vector<2x128xf32>
    %c0_20 = arith.constant 0 : index
    %c0_21 = arith.constant 0 : index
    %40 = vector.load %arg8[%c0_20, %c0_21] : memref<2x128xf32, #tpu.memory_space<vmem>>, vector<2x128xf32>
    tpu.vector_store %arg8[%c0_20, %c0_21], %39 {strides = array<i32>} : memref<2x128xf32, #tpu.memory_space<vmem>>, vector<2x128xf32>,
    %c0_22 = arith.constant 0 : index
    %c0_23 = arith.constant 0 : index
    %41 = vector.load %arg9[%c0_22, %c0_23] : memref<2x128xi32, #tpu.memory_space<vmem>>, vector<2x128xi32>
    %42 = arith.extui %9 : vector<2x128xi1> to vector<2x128xi32>
    %43 = arith.addi %41, %42 : vector<2x128xi32>
    %c0_24 = arith.constant 0 : index
    %c0_25 = arith.constant 0 : index
    %44 = vector.load %arg9[%c0_24, %c0_25] : memref<2x128xi32, #tpu.memory_space<vmem>>, vector<2x128xi32>
    tpu.vector_store %arg9[%c0_24, %c0_25], %43 {strides = array<i32>} : memref<2x128xi32, #tpu.memory_space<vmem>>, vector<2x128xi32>,
    %c0_i32_26 = arith.constant 0 : i32
    %45 = arith.cmpi eq, %arg2, %c0_i32_26 : i32
    %46 = arith.extui %45 : i1 to i32
    %c0_i32_27 = arith.constant 0 : i32
    %47 = arith.cmpi ne, %46, %c0_i32_27 : i32
    scf.if %47 {
      %c0_28 = arith.constant 0 : index
      %c0_29 = arith.constant 0 : index
      %48 = vector.load %arg8[%c0_28, %c0_29] : memref<2x128xf32, #tpu.memory_space<vmem>>, vector<2x128xf32>
      %49 = vector.shape_cast %48 : vector<2x128xf32> to vector<1x2x128xf32>
      %cst_30 = arith.constant dense<0.000000e+00> : vector<1xf32>
      %50 = vector.multi_reduction <add>, %49, %cst_30 [1, 2] : vector<1x2x128xf32> to vector<1xf32>
      %51 = vector.shape_cast %50 : vector<1xf32> to vector<1x1x1xf32>
      %52 = vector.extract %51[0, 0, 0] : f32 from vector<1x1x1xf32>
      %53 = vector.broadcast %52 : f32 to vector<1x1xf32>
      %54 = vector.shape_cast %53 : vector<1x1xf32> to vector<1x1x1x1xf32>
      %c0_31 = arith.constant 0 : index
      %c0_32 = arith.constant 0 : index
      %c0_33 = arith.constant 0 : index
      %c0_34 = arith.constant 0 : index
      %55 = vector.load %arg6[%c0_31, %c0_32, %c0_33, %c0_34] : memref<1x1x1x1xf32, #tpu.memory_space<vmem>>, vector<1x1x1x1xf32>
      tpu.vector_store %arg6[%c0_31, %c0_32, %c0_33, %c0_34], %54 {strides = array<i32>} : memref<1x1x1x1xf32, #tpu.memory_space<vmem>>, vector<1x1x1x1xf32>,
      %c0_35 = arith.constant 0 : index
      %c0_36 = arith.constant 0 : index
      %56 = vector.load %arg9[%c0_35, %c0_36] : memref<2x128xi32, #tpu.memory_space<vmem>>, vector<2x128xi32>
      %57 = vector.shape_cast %56 : vector<2x128xi32> to vector<1x2x128xi32>
      %cst_37 = arith.constant dense<0> : vector<1xi32>
      %58 = vector.multi_reduction <add>, %57, %cst_37 [1, 2] : vector<1x2x128xi32> to vector<1xi32>
      %59 = vector.shape_cast %58 : vector<1xi32> to vector<1x1x1xi32>
      %60 = vector.extract %59[0, 0, 0] : i32 from vector<1x1x1xi32>
      %61 = vector.broadcast %60 : i32 to vector<1x1xi32>
      %62 = vector.shape_cast %61 : vector<1x1xi32> to vector<1x1x1x1xi32>
      %c0_38 = arith.constant 0 : index
      %c0_39 = arith.constant 0 : index
      %c0_40 = arith.constant 0 : index
      %c0_41 = arith.constant 0 : index
      %63 = vector.load %arg7[%c0_38, %c0_39, %c0_40, %c0_41] : memref<1x1x1x1xi32, #tpu.memory_space<vmem>>, vector<1x1x1x1xi32>
      tpu.vector_store %arg7[%c0_38, %c0_39, %c0_40, %c0_41], %62 {strides = array<i32>} : memref<1x1x1x1xi32, #tpu.memory_space<vmem>>, vector<1x1x1x1xi32>,
    } else {
    }
    return
  }
  func.func @transform_0(%arg0: i32, %arg1: i32, %arg2: i32) -> (i32, i32, i32, i32) {
    %c1_i32 = arith.constant 1 : i32
    %0 = arith.muli %arg1, %c1_i32 : i32
    %1 = arith.addi %0, %arg2 : i32
    %c0_i32 = arith.constant 0 : i32
    %c0_i32_0 = arith.constant 0 : i32
    %c0_i32_1 = arith.constant 0 : i32
    return %arg0, %c0_i32, %1, %c0_i32_0 : i32, i32, i32, i32
  }
  func.func @transform_1(%arg0: i32, %arg1: i32, %arg2: i32) -> (i32, i32, i32, i32) {
    %c1_i32 = arith.constant 1 : i32
    %0 = arith.muli %arg1, %c1_i32 : i32
    %1 = arith.addi %0, %arg2 : i32
    %c0_i32 = arith.constant 0 : i32
    %c0_i32_0 = arith.constant 0 : i32
    %c0_i32_1 = arith.constant 0 : i32
    return %arg0, %c0_i32, %1, %c0_i32_0 : i32, i32, i32, i32
  }
  func.func @transform_2(%arg0: i32, %arg1: i32, %arg2: i32) -> (i32, i32) {
    %c0_i32 = arith.constant 0 : i32
    %c0_i32_0 = arith.constant 0 : i32
    %c0_i32_1 = arith.constant 0 : i32
    return %c0_i32, %c0_i32_0 : i32, i32
  }
  func.func @transform_3(%arg0: i32, %arg1: i32, %arg2: i32) -> (i32, i32, i32, i32) {
    %c0_i32 = arith.constant 0 : i32
    %c0_i32_0 = arith.constant 0 : i32
    %c0_i32_1 = arith.constant 0 : i32
    return %arg0, %arg1, %c0_i32, %c0_i32_0 : i32, i32, i32, i32
  }
  func.func @transform_4(%arg0: i32, %arg1: i32, %arg2: i32) -> (i32, i32, i32, i32) {
    %c0_i32 = arith.constant 0 : i32
    %c0_i32_0 = arith.constant 0 : i32
    %c0_i32_1 = arith.constant 0 : i32
    return %arg0, %arg1, %c0_i32, %c0_i32_0 : i32, i32, i32, i32
  }
}

</mosaic_0001>

<bundles_post_ra>
// kernel: cross_entropy2d.1
= control target key start
LH: loop header
LB: loop body
LE: loop exit
PB: predicated region body
PF: predicated region fallthrough
CT: control target
= control target key end

     0   :  { %s738_s15 = smov 0   ;;  %s740_s16 = smov 0   ;;  %s836_s0 = inlined_call_operand.vmem [shape: f32[2,5,2,128], index: 0, kind: input, shape index: {}]   ;;  %s837_s1 = inlined_call_operand.vmem [shape: s32[2,1,2,128], index: 1, kind: input, shape index: {}]   ;;  %s838_s2 = inlined_call_operand.vmem [shape: f32[5,1], index: 2, kind: input, shape index: {}]   ;;  %s839_s3 = inlined_call_operand.vmem [shape: f32[2,1,1,1], index: 3, kind: output, shape index: {0}]   ;;  %s840_s4 = inlined_call_operand.vmem [shape: s32[2,1,1,1], index: 4, kind: output, shape index: {1}]  }
   0x1   :  { %s742_s17 = smov 0  }
   0x2 LB: > { %s34_s18 = sadd.s32 1, %s704_s16  ;;  %p634_p0 = scmp.ge.s32.totalorder %s708_s17, 1  ;;  %s708_s17 = sphi %s742_s17, %s15_s17   ;;  %s704_s16 = sphi %s740_s16, %s842_s16   ;;  %s700_s15 = sphi %s738_s15, %s841_s15  }
   0x3   : > { %p36_p1 = scmp.ge.s32.totalorder %s34_s18, 2  ;;  %p215_p2 = scmp.lt.s32.totalorder %s708_s17, 3 }
   0x5   : > { %s844_s18 = smov (%p36_p1, %s34_s18), 0  ;;  %p216_p3 = pnand %p634_p0, %p215_p2 }
   0x6   : > { %p261_p4 = scmp.lt.s32.totalorder (!%p216_p3), %s700_s15, 1 }
   0x7   : > { %219 = sbr.rel (%p216_p3) target bundleno = 380 (0x17c), region = 32 }
   0xc   : > { %v348_v0 = vlaneseq  ;;  %v710_v1 = vmov 0   ;;  %v711_v2 = vmov 1966171168   ;;  %s846_s15 = smov (!%p261_p4, %s700_s15), 1  ;;  %v342_v6 = vld [vmem:[%s838_s2] sm:$0x1f] }
   0xd   : > { %671 = vset.pattern.permute.xlu0 %v710_v1  ;;  %296 = vst [vmem:[#allocation3] sm:$0x3] %v710_v1  ;;  %v346_v3 = vunpack.c.l.s4 %v711_v2  ;;  %672 = vset.pattern.permute.xlu1 %v710_v1  ;;  %s636_s19 = sshll.u32 %s846_s15, 1  ;;  %v344_v7 = vcombine.high %v342_v6, %v342_v6  ;;  %v712_v27 = vmov 0.0   ;;  %vm305_vm1 = vcmask 1041408   ;;  %s639_s25 = smul.u32 10, %s846_s15 }
   0xe   : > { %v349_v4 = vshrl.u32 %v348_v0, 7  ;;  %s277_s24 = scalar_lea.vmem %s837_s1, %s636_s19  ;;  %295 = vst [vmem:[#allocation2] sm:$0x3] %v712_v27  ;;  %s284_s5 = scalar_lea.vmem %s839_s3, %s846_s15  ;;  %vm481_vm7 = vcmask 0  }
   0xf   : > { %v347_v5 = vunpack.c.0.s8 %v346_v3  ;;  %v765_v9 = vld [vmem:[%s277_s24] sm:$0x3]  ;;  %s268_s28 = scalar_lea.vmem %s836_s0, %s639_s25  ;;  %s290_s9 = scalar_lea.vmem %s840_s4, %s846_s15 }
  0x10   : > { %vm303_vm0 = vcmp.ge.s32.totalorder %v765_v9, 0  ;;  %v404_v11 = vsub.s32 0, %v349_v4  ;;  %v297_v34 = vld [vmem:[%s268_s28] sm:$0x3]  ;;  %v301_v35 = vld [vmem:[%s268_s28 + $0x8] sm:$0x3] }
  0x11   : > { %v350_v8 = vsub.s32 %v347_v5, %v349_v4  ;;  %v463_v13 = vsel %vm303_vm0, 1, %v710_v1  ;;  %v306_v36 = vsel %vm305_vm1, %v297_v34, -inf  ;;  %v310_v37 = vsel %vm305_vm1, %v301_v35, -inf  ;;  %v299_v38 = vld [vmem:[%s268_s28 + $0x4] sm:$0x3] }
  0x12   : > { %v298_v39 = vld [vmem:[%s268_s28 + $0x2] sm:$0x3]  ;;  %v300_v40 = vld [vmem:[%s268_s28 + $0x6] sm:$0x3]  ;;  %v311_v41 = vmax.f32 %v306_v36, %v310_v37  ;;  %v308_v42 = vsel %vm305_vm1, %v299_v38, -inf }
  0x13   : > { %v351_v10 = vrot.slane %v342_v6, %v350_v8  ;;  %v358_v17 = vrot.slane %v344_v7, %v350_v8  ;;  %v307_v43 = vsel %vm305_vm1, %v298_v39, -inf  ;;  %v309_v44 = vsel %vm305_vm1, %v300_v40, -inf }
  0x14   : > { %v462_v12 = vld [vmem:[#allocation3] sm:$0x3]  ;;  %v313_v45 = vmax.f32 %v308_v42, %v309_v44  ;;  %v312_v46 = vmax.f32 %v311_v41, %v307_v43 }
  0x15   : > { %v464_v14 = vadd.s32 %v463_v13, %v462_v12  ;;  %v359_v15 = vcombine.high %v351_v10, %v351_v10  ;;  %v366_v16 = vrot.slane %v351_v10, %v350_v8  ;;  %v373_v24 = vrot.slane %v358_v17, %v350_v8 }
  0x16   : > { %v780_v47 = vmax.f32 %v312_v46, %v313_v45 }
  0x17   : > { %465 = vst [vmem:[#allocation3] sm:$0x3] %v464_v14  ;;  %v405_v18 = vrot.slane %v366_v16, %v404_v11  ;;  %v381_v19 = vcombine.high %v366_v16, %v366_v16  ;;  %v380_v20 = vrot.slane %v359_v15, %v350_v8  ;;  %v421_v26 = vrot.slane %v373_v24, %v404_v11 }
  0x18   : > { %v315_v48 = vsub.f32 %v297_v34, %v780_v47  ;;  %v316_v49 = vsub.f32 %v298_v39, %v780_v47  ;;  %v317_v51 = vsub.f32 %v299_v38, %v780_v47  ;;  %v318_v53 = vsub.f32 %v300_v40, %v780_v47 }
  0x19   : > { %423 = vperm.xlu0 %671, %v405_v18   ;;  %v413_v21 = vrot.slane %v381_v19, %v404_v11  ;;  %v409_v22 = vrot.slane %v380_v20, %v404_v11  ;;  %v382_v23 = vcombine.high %v380_v20, %v380_v20  ;;  %v319_v55 = vsub.f32 %v301_v35, %v780_v47 }
  0x1a   : > { %v320_v50 = vmul.f32 1.442695, %v315_v48  ;;  %v322_v52 = vmul.f32 1.442695, %v316_v49  ;;  %v324_v54 = vmul.f32 1.442695, %v317_v51 }
  0x1b   : > { %431 = vperm.xlu1 %672, %v413_v21   ;;  %v417_v25 = vrot.slane %v382_v23, %v404_v11  ;;  %v326_v56 = vmul.f32 1.442695, %v318_v53  ;;  %v328_v57 = vmul.f32 1.442695, %v319_v55  ;;  %v304_v8 = vsel %vm303_vm0, %v765_v9, 0 }
  0x1c   : > { %674 = vpow2.f32 %v320_v50  ;;  %vm384_vm2 = vcmp.eq.s32.totalorder %v304_v8, 1  ;;  %vm383_vm3 = vcmp.eq.s32.totalorder %v304_v8, 0  ;;  %vm385_vm4 = vcmp.eq.s32.totalorder %v304_v8, 2  ;;  %v456_v48 = vld [vmem:[#allocation2] sm:$0x3] }
  0x1d   : > { %427 = vperm.xlu0 %671, %v409_v22   ;;  %676 = vpow2.f32 %v322_v52  ;;  %v388_v10 = vsel %vm383_vm3, %v297_v34, 0.0  ;;  %v389_v11 = vsel %vm384_vm2, %v298_v39, 0.0  ;;  %v390_v14 = vsel %vm385_vm4, %v299_v38, 0.0 }
  0x1e   : > { %v483_v28 = vld [vmem:[#allocation3] sm:$0x3]  ;;  %678 = vpow2.f32 %v324_v54  ;;  %v393_v12 = vsel %vm305_vm1, %v388_v10, 0.0  ;;  %v394_v13 = vsel %vm305_vm1, %v389_v11, 0.0  ;;  %vm386_vm5 = vcmp.eq.s32.totalorder %v304_v8, 3 }
  0x1f   : > { %435 = vperm.xlu1 %672, %v417_v25   ;;  %v484_v29 = vsel %vm305_vm1, %v483_v28, 0  ;;  %680 = vpow2.f32 %v326_v56  ;;  %v395_v15 = vadd.f32 %v394_v13, %v393_v12  ;;  %v396_v16 = vsel %vm305_vm1, %v390_v14, 0.0 }
  0x20   : > { %v485_v30 = vand.u32 65535, %v484_v29  ;;  %v486_v31 = vshrl.u32 %v484_v29, 16  ;;  %682 = vpow2.f32 %v328_v57  ;;  %v391_v17 = vsel %vm386_vm5, %v300_v40, 0.0 }
  0x21   : > { %439 = vperm.xlu0 %671, %v421_v26   ;;  %vm387_vm6 = vcmp.eq.s32.totalorder %v304_v8, 4  ;;  %v397_v18 = vadd.f32 %v396_v16, %v395_v15  ;;  %v398_v21 = vsel %vm305_vm1, %v391_v17, 0.0 }
  0x22   : > { %v487_v32 = vcvt.s32.f32 %v485_v30  ;;  %v488_v33 = vcvt.s32.f32 %v486_v31  ;;  %v392_v22 = vsel %vm387_vm6, %v301_v35, 0.0 }
  0x23   : > { %v399_v25 = vadd.f32 %v398_v21, %v397_v18  ;;  %v400_v28 = vsel %vm305_vm1, %v392_v22, 0.0 }
  0x25   : > { %v401_v37 = vadd.f32 %v400_v28, %v399_v25 }
  0x29   : > { %v675_v58 = vpop.eup %674 }
  0x2a   : > { %v677_v59 = vpop.eup %676  ;;  %v330_v60 = vsel %vm305_vm1, %v675_v58, 0.0 }
  0x2b   : > { %v331_v61 = vsel %vm305_vm1, %v677_v59, 0.0  ;;  %v679_v62 = vpop.eup %678 }
  0x2c   : > { %v332_v63 = vadd.f32 %v331_v61, %v330_v60  ;;  %v333_v0 = vsel %vm305_vm1, %v679_v62, 0.0  ;;  %v681_v1 = vpop.eup %680 }
  0x2d   : > { %v335_v3 = vsel %vm305_vm1, %v681_v1, 0.0  ;;  %v683_v4 = vpop.eup %682 }
  0x2e   : > { %v334_v2 = vadd.f32 %v333_v0, %v332_v63  ;;  %v337_v6 = vsel %vm305_vm1, %v683_v4, 0.0 }
  0x30   : > { %v336_v5 = vadd.f32 %v335_v3, %v334_v2 }
  0x32   : > { %v338_v7 = vadd.f32 %v337_v6, %v336_v5 }
  0x34   : > { %684 = vlog2.f32 %v338_v7 }
  0x40   : > { %489 = vadd.xlane.f32.xlu0 %v487_v32 }
  0x41   : > { %v685_v19 = vpop.eup %684 }
  0x42   : > { %v340_v26 = vmul.f32 0.6931472, %v685_v19 }
  0x43   : > { %491 = vadd.xlane.f32.xlu1 %v488_v33 }
  0x44   : > { %v341_v36 = vadd.f32 %v340_v26, %v780_v47 }
  0x46   : > { %v457_v44 = vsub.f32 %v341_v36, %v401_v37 }
  0x94   : > { %v424_v20 = vpop.permute.xlu0 %423 }
  0x95   : > { %v442_v24 = vsel %vm383_vm3, %v424_v20, 0.0 }
  0x96   : > { %v432_v23 = vpop.permute.xlu1 %431  ;;  %v447_v31 = vsel %vm305_vm1, %v442_v24, 0.0 }
  0x97   : > { %v444_v29 = vsel %vm385_vm4, %v432_v23, 0.0 }
  0x98   : > { %v428_v27 = vpop.permute.xlu0 %427  ;;  %v450_v38 = vsel %vm305_vm1, %v444_v29, 0.0 }
  0x99   : > { %v443_v30 = vsel %vm384_vm2, %v428_v27, 0.0 }
  0x9a   : > { %v448_v32 = vsel %vm305_vm1, %v443_v30, 0.0  ;;  %v436_v33 = vpop.permute.xlu1 %435 }
  0x9b   : > { %v449_v34 = vadd.f32 %v448_v32, %v447_v31  ;;  %v445_v35 = vsel %vm386_vm5, %v436_v33, 0.0 }
  0x9c   : > { %v440_v39 = vpop.permute.xlu0 %439  ;;  %v452_v42 = vsel %vm305_vm1, %v445_v35, 0.0 }
  0x9d   : > { %v451_v40 = vadd.f32 %v450_v38, %v449_v34  ;;  %v446_v41 = vsel %vm387_vm6, %v440_v39, 0.0 }
  0x9e   : > { %v454_v45 = vsel %vm305_vm1, %v446_v41, 0.0 }
  0x9f   : > { %v453_v43 = vadd.f32 %v452_v42, %v451_v40 }
  0xa1   : > { %v455_v46 = vadd.f32 %v454_v45, %v453_v43 }
  0xa3   : > { %v458_v49 = vmul.f32 %v457_v44, %v455_v46 }
  0xa5   : > { %v459_v50 = vsel %vm303_vm0, %v458_v49, 0.0 }
  0xa6   : > { %v460_v47 = vadd.f32 %v459_v50, %v456_v48 }
  0xa8   : > { %461 = vst [vmem:[#allocation2] sm:$0x3] %v460_v47 }
  0xaf   : > { %v469_v51 = vld [vmem:[#allocation2] sm:$0x3] }
  0xb0   : > { %v470_v52 = vsel %vm305_vm1, %v469_v51, 0.0 }
  0xb1   : > { %471 = vadd.xlane.f32.xlu0 %v470_v52 }
  0xc9   : > { %v490_v55 = vpop.xlane.xlu0 %489 }
  0xca   : > { %v493_v57 = vcvt.f32.s32 %v490_v55 }
  0xcc   : > { %v492_v53 = vpop.xlane.xlu1 %491 }
  0xcd   : > { %v494_v54 = vcvt.f32.s32 %v492_v53 }
  0xcf   : > { %v495_v56 = vshll.u32 %v494_v54, 16 }
  0xd1   : > { %v496_v58 = vadd.s32 %v495_v56, %v493_v57 }
  0xd3   : > { %v497_v59 = vrot.slane %v496_v58, 4 }
  0xd5   : > { %v498_v60 = vadd.s32 %v497_v59, %v496_v58 }
  0xd7   : > { %v499_v62 = vrot.slane %v498_v60, 2 }
  0xd9   : > { %v500_v0 = vadd.s32 %v499_v62, %v498_v60 }
  0xdb   : > { %v501_v3 = vrot.slane %v500_v0, 1 }
  0xdd   : > { %v502_v6 = vadd.s32 %v501_v3, %v500_v0 }
 0x13a   : > { %v472_v61 = vpop.xlane.xlu0 %471 }
 0x13b   : > { %v473_v9 = vrot.slane %v472_v61, 4 }
 0x13d   : > { %v474_v63 = vadd.f32 %v473_v9, %v472_v61 }
 0x13f   : > { %v475_v1 = vrot.slane %v474_v63, 2 }
 0x141   : > { %v476_v2 = vadd.f32 %v475_v1, %v474_v63 }
 0x143   : > { %v477_v4 = vrot.slane %v476_v2, 1 }
 0x145   : > { %v478_v5 = vadd.f32 %v477_v4, %v476_v2 }
 0x147   : > { %640 = vpush %v478_v5 }
 0x148   : > { %642 = vpush %v502_v6 }
 0x178   : > { %s641_s6 = spop %640 }
 0x179   : > { %v480_v7 = vstv %s641_s6  ;;  %s643_s10 = spop %642 }
 0x17a   : > { %482 = vst.msk [vmem:[%s284_s5] sm:$0x1] %vm481_vm7, %v480_v7  ;;  %v504_v8 = vstv %s643_s10 }
 0x17b   : > { %505 = vst.msk [vmem:[%s290_s9] sm:$0x1] %vm481_vm7, %v504_v8 }
 0x17c PF: > { %s15_s17 = sadd.s32 1, %s708_s17   ;;  %s841_s15 = smov %s704_s16 }
 0x17d   : > { %p12_p5 = scmp.ge.s32.totalorder %s15_s17, 4   ;;  %s842_s16 = smov %s844_s18 }
 0x17f   :  { %14 = sbr.rel (!%p12_p5) target bundleno = 2 (0x2), region = 85 }

</bundles_post_ra>
